<compile_context>
chip_gen: v7x
topology: tpu7x:2x2x1
jax: 0.10.0
libtpu: 0.0.40
codegen_flags: <defaults>
</compile_context>

<pallas_src>
import jax
import jax.numpy as jnp
from jax import lax
from jax.experimental import pallas as pl
from jax.experimental.pallas import tpu as pltpu


def _mlp_kernel(x_ref, w1_ref, b1_ref, w2_ref, b2_ref, w3_ref, b3_ref, o_ref):
    x = x_ref[...]                                                   # (block_b, E)
    # fc1 + ReLU
    h1 = jnp.dot(x, w1_ref[...], preferred_element_type=jnp.float32)
    h1 = jnp.maximum(h1 + b1_ref[...], 0.0).astype(x.dtype)          # (block_b, H1)
    # fc2 + ReLU
    h2 = jnp.dot(h1, w2_ref[...], preferred_element_type=jnp.float32)
    h2 = jnp.maximum(h2 + b2_ref[...], 0.0).astype(x.dtype)          # (block_b, H2)
    # fc3: w3 is passed as a (1, H2) row; contract H2 against H2 (A @ B^T) so the
    # result leaves the MXU already lane-dense as (1, block_b) — no relayout,
    # no masked single-lane stores.
    out_row = lax.dot_general(
        w3_ref[...], h2,
        dimension_numbers=(((1,), (1,)), ((), ())),
        preferred_element_type=jnp.float32)                          # (1, block_b)
    o_ref[...] = (out_row + b3_ref[...]).astype(o_ref.dtype)


def _pick_block_b(batch):
    if batch <= 512:
        return batch                      # single grid step, block == full dim
    for tile in (512, 256, 128, 8):       # MXU-friendly multiples first
        if batch % tile == 0:
            return tile
    return batch                          # odd batch: fall back to a single block


def glove_classifier_forward(x, params, *, block_b=None, use_bf16=False):
    """x: (B, E) float32.  params: w1 (E,H1), b1 (1,H1), w2 (H1,H2), b2 (1,H2),
    w3 (H2,1), b3 (1,1) — i.e. the transposed nn.Linear weights (x @ W + b)."""
    w1, b1 = params["w1"], params["b1"]
    w2, b2 = params["w2"], params["b2"]
    w3, b3 = params["w3"], params["b3"]

    B, E = x.shape
    H1 = w1.shape[1]
    H2 = w2.shape[1]

    w3_row = w3.T                         # (1, H2) row for the A @ B^T fc3
    b3 = b3.reshape(1, 1)

    if use_bf16:                          # v6e/v7x: halve HBM bytes, keep f32 accumulation
        x = x.astype(jnp.bfloat16)
        w1 = w1.astype(jnp.bfloat16)
        w2 = w2.astype(jnp.bfloat16)
        w3_row = w3_row.astype(jnp.bfloat16)

    if block_b is None:
        block_b = _pick_block_b(B)
    block_b = min(block_b, B)
    assert B % block_b == 0, "batch must be a multiple of block_b"
    num_blocks = B // block_b

    out_row = pl.pallas_call(
        _mlp_kernel,
        out_shape=jax.ShapeDtypeStruct((1, B), jnp.float32),   # lane-dense output row
        grid_spec=pltpu.PrefetchScalarGridSpec(
            num_scalar_prefetch=0,
            grid=(num_blocks,),
            in_specs=[
                pl.BlockSpec((block_b, E), lambda i: (i, 0)),   # x tile per grid step
                pl.BlockSpec((E, H1), lambda i: (0, 0)),        # constant-index weights:
                pl.BlockSpec((1, H1), lambda i: (0, 0)),        #   DMA'd once, kept
                pl.BlockSpec((H1, H2), lambda i: (0, 0)),       #   resident across steps
                pl.BlockSpec((1, H2), lambda i: (0, 0)),
                pl.BlockSpec((1, H2), lambda i: (0, 0)),        # w3 row
                pl.BlockSpec((1, 1), lambda i: (0, 0)),         # b3 scalar
            ],
            out_specs=pl.BlockSpec((1, block_b), lambda i: (0, i)),
        ),
        compiler_params=pltpu.CompilerParams(
            dimension_semantics=("parallel",),    # batch tiles shard across TensorCores
        ),
    )(x, w1, b1, w2, b2, w3_row, b3)

    return out_row.reshape(B, 1)


def init_params(key, embedding_dimension, hidden1, hidden2):
    """Deterministic init mirroring the nn.Linear shapes of GloveClassifier.
    PyTorch stores W as (out, in); we store the transpose (in, out) for x @ W."""
    k1, k2, k3, k4, k5, k6 = jax.random.split(key, 6)

    def linear(kw, kb, fan_in, fan_out):
        bound = 1.0 / jnp.sqrt(fan_in)
        w = jax.random.uniform(kw, (fan_in, fan_out), jnp.float32, -bound, bound)
        b = jax.random.uniform(kb, (1, fan_out), jnp.float32, -bound, bound)
        return w, b

    w1, b1 = linear(k1, k2, embedding_dimension, hidden1)
    w2, b2 = linear(k3, k4, hidden1, hidden2)
    w3, b3 = linear(k5, k6, hidden2, 1)
    return {"w1": w1, "b1": b1, "w2": w2, "b2": b2, "w3": w3, "b3": b3}


def reference_forward(x, p):
    h1 = jnp.maximum(x @ p["w1"] + p["b1"], 0.0)
    h2 = jnp.maximum(h1 @ p["w2"] + p["b2"], 0.0)
    return h2 @ p["w3"] + p["b3"]


if __name__ == "__main__":
    # Shapes consistent with GloveClassifier: embedding_dim=32, hidden1=128, hidden2=64
    E, H1, H2 = 32, 128, 64

    key = jax.random.PRNGKey(0)
    kx, kp = jax.random.split(key)
    params = init_params(kp, E, H1, H2)

    # Small batch (B=8): whole batch handled in a single grid step.
    x_small = jax.random.normal(kx, (8, E), dtype=jnp.float32)
    out_small = jax.block_until_ready(glove_classifier_forward(x_small, params))
    ref_small = reference_forward(x_small, params)
    assert out_small.shape == (8, 1), out_small.shape
    assert jnp.allclose(out_small, ref_small, atol=1e-4, rtol=1e-4), "small-batch mismatch"

    # Larger batch (B=1024): two 512-row tiles, parallel grid axis (megacore-friendly).
    x_big = jax.random.normal(kx, (1024, E), dtype=jnp.float32)
    out_big = jax.block_until_ready(glove_classifier_forward(x_big, params))
    ref_big = reference_forward(x_big, params)
    assert out_big.shape == (1024, 1), out_big.shape
    assert jnp.allclose(out_big, ref_big, atol=1e-4, rtol=1e-4), "big-batch mismatch"

    # bf16 operand path (v6e/v7x roofline win), f32 accumulation, looser tolerance.
    out_bf16 = jax.block_until_ready(
        glove_classifier_forward(x_big, params, use_bf16=True))
    assert out_bf16.shape == (1024, 1), out_bf16.shape
    assert jnp.allclose(out_bf16, ref_big, atol=0.15, rtol=0.15), "bf16 mismatch"

    print("KERNEL_OK")
</pallas_src>

<mosaic_0001>
module attributes {stable_mosaic.version = 11 : i64} {
  func.func @_mlp_kernel(%arg0: i32, %arg1: memref<8x32xf32, #tpu.memory_space<vmem>>, %arg2: memref<32x128xf32, #tpu.memory_space<vmem>>, %arg3: memref<1x128xf32, #tpu.memory_space<vmem>>, %arg4: memref<128x64xf32, #tpu.memory_space<vmem>>, %arg5: memref<1x64xf32, #tpu.memory_space<vmem>>, %arg6: memref<1x64xf32, #tpu.memory_space<vmem>>, %arg7: memref<1x1xf32, #tpu.memory_space<vmem>>, %arg8: memref<1x8xf32, #tpu.memory_space<vmem>>) attributes {dimension_semantics = [#tpu.dimension_semantics<parallel>], iteration_bounds = array<i64: 1>, scalar_prefetch = 0 : i64, scratch_operands = 0 : i64, tpu.core_type = #tpu.core_type<tc>, window_params = [{transform_indices = @transform_0, window_bounds = array<i64: 8, 32>}, {pipeline_mode = #tpu.pipeline_mode<synchronous>, transform_indices = @transform_1, window_bounds = array<i64: 32, 128>}, {pipeline_mode = #tpu.pipeline_mode<synchronous>, transform_indices = @transform_2, window_bounds = array<i64: 1, 128>}, {pipeline_mode = #tpu.pipeline_mode<synchronous>, transform_indices = @transform_3, window_bounds = array<i64: 128, 64>}, {pipeline_mode = #tpu.pipeline_mode<synchronous>, transform_indices = @transform_4, window_bounds = array<i64: 1, 64>}, {pipeline_mode = #tpu.pipeline_mode<synchronous>, transform_indices = @transform_5, window_bounds = array<i64: 1, 64>}, {pipeline_mode = #tpu.pipeline_mode<synchronous>, transform_indices = @transform_6, window_bounds = array<i64: 1, 1>}, {transform_indices = @transform_7, window_bounds = array<i64: 1, 8>}]} {
    %c0 = arith.constant 0 : index
    %c0_0 = arith.constant 0 : index
    %0 = vector.load %arg1[%c0, %c0_0] : memref<8x32xf32, #tpu.memory_space<vmem>>, vector<8x32xf32>
    %c0_1 = arith.constant 0 : index
    %c0_2 = arith.constant 0 : index
    %1 = vector.load %arg2[%c0_1, %c0_2] : memref<32x128xf32, #tpu.memory_space<vmem>>, vector<32x128xf32>
    %cst = arith.constant dense<0.000000e+00> : vector<8x128xf32>
    %2 = tpu.matmul %0, %1, %cst {dimension_numbers = #tpu.dot_dimension_numbers<[1], [0], [0], [1], [0, 0, 1, 1], [], []>} : vector<8x32xf32>, vector<32x128xf32>, vector<8x128xf32> -> vector<8x128xf32>
    %c0_3 = arith.constant 0 : index
    %c0_4 = arith.constant 0 : index
    %3 = vector.load %arg3[%c0_3, %c0_4] : memref<1x128xf32, #tpu.memory_space<vmem>>, vector<1x128xf32>
    %4 = vector.broadcast %3 : vector<1x128xf32> to vector<8x128xf32>
    %5 = arith.addf %2, %4 : vector<8x128xf32>
    %cst_5 = arith.constant 0.000000e+00 : f32
    %6 = vector.broadcast %cst_5 : f32 to vector<8x128xf32>
    %7 = arith.maximumf %5, %6 : vector<8x128xf32>
    %c0_6 = arith.constant 0 : index
    %c0_7 = arith.constant 0 : index
    %8 = vector.load %arg4[%c0_6, %c0_7] : memref<128x64xf32, #tpu.memory_space<vmem>>, vector<128x64xf32>
    %cst_8 = arith.constant dense<0.000000e+00> : vector<8x64xf32>
    %9 = tpu.matmul %7, %8, %cst_8 {dimension_numbers = #tpu.dot_dimension_numbers<[1], [0], [0], [1], [0, 0, 1, 1], [], []>} : vector<8x128xf32>, vector<128x64xf32>, vector<8x64xf32> -> vector<8x64xf32>
    %c0_9 = arith.constant 0 : index
    %c0_10 = arith.constant 0 : index
    %10 = vector.load %arg5[%c0_9, %c0_10] : memref<1x64xf32, #tpu.memory_space<vmem>>, vector<1x64xf32>
    %11 = vector.broadcast %10 : vector<1x64xf32> to vector<8x64xf32>
    %12 = arith.addf %9, %11 : vector<8x64xf32>
    %cst_11 = arith.constant 0.000000e+00 : f32
    %13 = vector.broadcast %cst_11 : f32 to vector<8x64xf32>
    %14 = arith.maximumf %12, %13 : vector<8x64xf32>
    %c0_12 = arith.constant 0 : index
    %c0_13 = arith.constant 0 : index
    %15 = vector.load %arg6[%c0_12, %c0_13] : memref<1x64xf32, #tpu.memory_space<vmem>>, vector<1x64xf32>
    %cst_14 = arith.constant dense<0.000000e+00> : vector<1x8xf32>
    %16 = tpu.matmul %15, %14, %cst_14 {dimension_numbers = #tpu.dot_dimension_numbers<[1], [1], [0], [0], [0, 0, 1, 0], [], []>} : vector<1x64xf32>, vector<8x64xf32>, vector<1x8xf32> -> vector<1x8xf32>
    %c0_15 = arith.constant 0 : index
    %c0_16 = arith.constant 0 : index
    %17 = vector.load %arg7[%c0_15, %c0_16] : memref<1x1xf32, #tpu.memory_space<vmem>>, vector<1x1xf32>
    %18 = vector.broadcast %17 : vector<1x1xf32> to vector<1x8xf32>
    %19 = arith.addf %16, %18 : vector<1x8xf32>
    %c0_17 = arith.constant 0 : index
    %c0_18 = arith.constant 0 : index
    %20 = vector.load %arg8[%c0_17, %c0_18] : memref<1x8xf32, #tpu.memory_space<vmem>>, vector<1x8xf32>
    tpu.vector_store %arg8[%c0_17, %c0_18], %19 {strides = array<i32>} : memref<1x8xf32, #tpu.memory_space<vmem>>, vector<1x8xf32>,
    return
  }
  func.func @transform_0(%arg0: i32) -> (i32, i32) {
    %c0_i32 = arith.constant 0 : i32
    %c0_i32_0 = arith.constant 0 : i32
    return %arg0, %c0_i32 : i32, i32
  }
  func.func @transform_1(%arg0: i32) -> (i32, i32) {
    %c0_i32 = arith.constant 0 : i32
    %c0_i32_0 = arith.constant 0 : i32
    %c0_i32_1 = arith.constant 0 : i32
    return %c0_i32, %c0_i32_0 : i32, i32
  }
  func.func @transform_2(%arg0: i32) -> (i32, i32) {
    %c0_i32 = arith.constant 0 : i32
    %c0_i32_0 = arith.constant 0 : i32
    %c0_i32_1 = arith.constant 0 : i32
    return %c0_i32, %c0_i32_0 : i32, i32
  }
  func.func @transform_3(%arg0: i32) -> (i32, i32) {
    %c0_i32 = arith.constant 0 : i32
    %c0_i32_0 = arith.constant 0 : i32
    %c0_i32_1 = arith.constant 0 : i32
    return %c0_i32, %c0_i32_0 : i32, i32
  }
  func.func @transform_4(%arg0: i32) -> (i32, i32) {
    %c0_i32 = arith.constant 0 : i32
    %c0_i32_0 = arith.constant 0 : i32
    %c0_i32_1 = arith.constant 0 : i32
    return %c0_i32, %c0_i32_0 : i32, i32
  }
  func.func @transform_5(%arg0: i32) -> (i32, i32) {
    %c0_i32 = arith.constant 0 : i32
    %c0_i32_0 = arith.constant 0 : i32
    %c0_i32_1 = arith.constant 0 : i32
    return %c0_i32, %c0_i32_0 : i32, i32
  }
  func.func @transform_6(%arg0: i32) -> (i32, i32) {
    %c0_i32 = arith.constant 0 : i32
    %c0_i32_0 = arith.constant 0 : i32
    %c0_i32_1 = arith.constant 0 : i32
    return %c0_i32, %c0_i32_0 : i32, i32
  }
  func.func @transform_7(%arg0: i32) -> (i32, i32) {
    %c0_i32 = arith.constant 0 : i32
    %c0_i32_0 = arith.constant 0 : i32
    return %c0_i32, %arg0 : i32, i32
  }
}

</mosaic_0001>

<bundles_post_ra>
// kernel: tpu_custom_call.1
= control target key start
LH: loop header
LB: loop body
LE: loop exit
PB: predicated region body
PF: predicated region fallthrough
CT: control target
= control target key end

     0   :  { %s589_s0 = inlined_call_operand.vmem [shape: f32[8,32], index: 0, kind: input, shape index: {}]   ;;  %s590_s1 = inlined_call_operand.vmem [shape: f32[32,128], index: 1, kind: input, shape index: {}]   ;;  %s591_s2 = inlined_call_operand.vmem [shape: f32[1,128], index: 2, kind: input, shape index: {}]   ;;  %s592_s3 = inlined_call_operand.vmem [shape: f32[128,64], index: 3, kind: input, shape index: {}]   ;;  %s593_s4 = inlined_call_operand.vmem [shape: f32[1,64], index: 4, kind: input, shape index: {}]   ;;  %s594_s5 = inlined_call_operand.vmem [shape: f32[1,64], index: 5, kind: input, shape index: {}]   ;;  %s595_s6 = inlined_call_operand.<no memory space> [shape: f32[1,1], index: 6, kind: input, shape index: {}]   ;;  %s596_s7 = inlined_call_operand.hbm [shape: f32[1,8], index: 7, kind: output, shape index: {}]  }
   0x1   :  { %v12_v0 = vstv %s595_s6 }
   0x2   :  { %13 = vst [vmem:[#allocation2] sm:$0x1] %v12_v0 }
   0x3   :  { %v30_v1 = vld [vmem:[%s590_s1] sm:$0xff]  ;;  %v31_v2 = vld [vmem:[%s590_s1 + $0x8] sm:$0xff]  ;;  %v32_v3 = vld [vmem:[%s590_s1 + $0x10] sm:$0xff]  ;;  %v454_v4 = vmov 0.0|0.0   ;;  %vm455_vm0 = vmmov 0   ;;  %v456_v7 = vmov 0.0  }
   0x4   :  { %394 = vmatprep.subr.bf16.mxu0 %v454_v4  ;;  %v395_v5 = vpack.c.bf16 %v31_v2, %v30_v1  ;;  %v33_v6 = vld [vmem:[%s590_s1 + $0x18] sm:$0xff]  ;;  %351 = vmatprep.mubr.msk.f32.mxu0 %vm455_vm0, %v456_v7  ;;  %v116_v8 = vld [vmem:[%s592_s3] sm:$0xff]  ;;  %v117_v9 = vld [vmem:[%s592_s3 + $0x8] sm:$0xff] }
   0x5   :  { %400 = vmatprep.subr.bf16.mxu1 %v454_v4  ;;  %v118_v10 = vld [vmem:[%s592_s3 + $0x10] sm:$0xff]  ;;  %v119_v11 = vld [vmem:[%s592_s3 + $0x18] sm:$0xff]  ;;  %386 = vmatprep.mubr.msk.f32.mxu1 %vm455_vm0, %v456_v7  ;;  %v398_v12 = vpack.c.bf16 %v33_v6, %v32_v3  ;;  %v401_v13 = vpack.c.bf16 %v117_v9, %v116_v8  ;;  %v120_v15 = vld [vmem:[%s592_s3 + $0x20] sm:$0xff] }
   0x6   :  { %396 = vmatpush3.bf16.msra.mxu0 %v395_v5  ;;  %v404_v14 = vpack.c.bf16 %v119_v11, %v118_v10  ;;  %v121_v16 = vld [vmem:[%s592_s3 + $0x28] sm:$0xff] }
   0x7   :  { %397 = vmatprep.subr.bf16.mxu0 %v454_v4  ;;  %402 = vmatpush3.bf16.msra.mxu1 %v401_v13 }
   0x8   :  { %403 = vmatprep.subr.bf16.mxu1 %v454_v4 }
   0x9   :  { %14 = vsyncpa [#allocation4], 0  ;;  %v29_v17 = vld [vmem:[%s589_s0] sm:$0xff]  ;;  %vm41_vm1 = vcmask 261120   ;;  %v407_v18 = vpack.c.bf16 %v121_v16, %v120_v15  ;;  %v122_v19 = vld [vmem:[%s592_s3 + $0x30] sm:$0xff]  ;;  %v457_v40 = vmov 0   ;;  %v217_v47 = vlaneseq }
   0xa   :  { %399 = vmatpush3.bf16.msra.mxu0 %v398_v12  ;;  %v123_v20 = vld [vmem:[%s592_s3 + $0x38] sm:$0xff]  ;;  %v124_v22 = vld [vmem:[%s592_s3 + $0x40] sm:$0xff]  ;;  %v125_v23 = vld [vmem:[%s592_s3 + $0x48] sm:$0xff]  ;;  %429 = vset.pattern.permute.xlu0 %v457_v40  ;;  %vm221_vm2 = vcmask 523264   ;;  %s458_s21 = smov [#allocation3]   ;;  %vm298_vm3 = vcmask 57344  }
   0xb   :  { %389 = vmatprep.subr.mxu0 %v456_v7  ;;  %405 = vmatpush3.bf16.msra.mxu1 %v404_v14  ;;  %v410_v21 = vpack.c.bf16 %v123_v20, %v122_v19  ;;  %v413_v24 = vpack.c.bf16 %v125_v23, %v124_v22  ;;  %v126_v25 = vld [vmem:[%s592_s3 + $0x50] sm:$0xff]  ;;  %v127_v26 = vld [vmem:[%s592_s3 + $0x58] sm:$0xff]  ;;  %v128_v28 = vld [vmem:[%s592_s3 + $0x60] sm:$0xff]  ;;  %v218_v48 = vshrl.u32 %v217_v47, 7  ;;  %s306_s22 = sshll.u32 %s458_s21, 4  ;;  %s307_s22 = int_to_ptr.vmem [resolvable:$true] %s306_s22 }
   0xc   :  { %406 = vmatprep.subr.bf16.mxu1 %v454_v4  ;;  %v416_v27 = vpack.c.bf16 %v127_v26, %v126_v25  ;;  %v129_v29 = vld [vmem:[%s592_s3 + $0x68] sm:$0xff]  ;;  %v130_v31 = vld [vmem:[%s592_s3 + $0x70] sm:$0xff]  ;;  %v131_v32 = vld [vmem:[%s592_s3 + $0x78] sm:$0xff]  ;;  %s434_s23 = scalar_lea.vmem %s307_s22, 32  ;;  %p435_p1 = scmp.lt.s32.totalorder %s307_s22, %s307_s22 }
   0xd   :  { %352 = vmatmul.mubr.msk.f32.vlgmr.msra.gmra.mrb[0].mxu0 %vm41_vm1, %v29_v17  ;;  %v419_v30 = vpack.c.bf16 %v129_v29, %v128_v28  ;;  %v422_v33 = vpack.c.bf16 %v131_v32, %v130_v31  ;;  %v314_v34 = vld [vmem:[%s591_s2] ss:$0 sm:$0xff]  ;;  %v219_v49 = vsub.s32 0, %v218_v48 }
   0xe   :  { %391 = vmatprep.mubr.msk.f32.mxu0 %vm455_vm0, %v456_v7  ;;  %v211_v39 = vld [vmem:[#allocation2] sm:$0x1] }
   0xf   :  { %408 = vmatpush3.bf16.msra.mxu1 %v407_v18  ;;  %214 = vperm.xlu0 %429, %v211_v39   ;;  %v316_v41 = vld [vmem:[%s593_s4] ss:$0 sm:$0xff]  ;;  %s430_s4 = scalar_lea.vmem %s307_s22, 16 }
  0x10   :  { %409 = vmatprep.subr.bf16.mxu1 %v454_v4  ;;  %v210_v46 = vld [vmem:[%s594_s5] sm:$0x1]  ;;  %p431_p0 = scmp.ne.s32.totalorder %s307_s22, %s430_s4  ;;  %p436_p2 = scmp.lt.s32.totalorder %s434_s23, %s430_s4 }
  0x12   :  { %p437_p3 = por %p436_p2, %p435_p1 }
  0x13   :  { %411 = vmatpush3.bf16.msra.mxu1 %v410_v21 }
  0x14   :  { %412 = vmatprep.subr.bf16.mxu1 %v454_v4  ;;  %p438_p4 = pnand %p437_p3, %p431_p0 }
  0x17   :  { %414 = vmatpush3.bf16.msra.mxu1 %v413_v24 }
  0x18   :  { %415 = vmatprep.subr.bf16.mxu1 %v454_v4 }
  0x1b   :  { %417 = vmatpush3.bf16.msra.mxu1 %v416_v27 }
  0x1c   :  { %418 = vmatprep.subr.bf16.mxu1 %v454_v4 }
  0x1f   :  { %420 = vmatpush3.bf16.msra.mxu1 %v419_v30 }
  0x20   :  { %421 = vmatprep.subr.bf16.mxu1 %v454_v4 }
  0x23   :  { %423 = vmatpush3.bf16.msra.mxu1 %v422_v33 }
  0x8e   :  { %v215_v50 = vpop.permute.xlu0 %214 }
  0x8f   :  { %v220_v51 = vrot.slane %v215_v50, %v219_v49 }
  0xe0   :  { %v111_v35 = vpop.f32.mrb[0].mxu0 }
  0xe1   :  { %v112_v36 = vadd.f32 %v314_v34, %v111_v35  ;;  %v353_v37 = vpop.f32.mrb[1].mxu0 }
  0xe3   :  { %v115_v38 = vmax.f32 %v112_v36, 0.0 }
  0xe5   :  { %387 = vmatmul.mubr.f32.vlgmr.msra.gmra.mrb[0].mxu1 %v115_v38 }
 0x1b8   :  { %v205_v42 = vpop.f32.mrb[0].mxu1 }
 0x1b9   :  { %v206_v43 = vadd.f32 %v316_v41, %v205_v42  ;;  %v388_v44 = vpop.f32.mrb[1].mxu1 }
 0x1bb   :  { %v209_v45 = vmax.f32 %v206_v43, 0.0 }
 0x1bd   :  { %390 = vmatpush3.xpose.msk.msra.mxu0 %vm221_vm2, %v209_v45 }
 0x1c0   :  { %392 = vmatmul.mubr.msk.f32.vlgmr.msra.gmra.mrb[2].mxu0 %vm221_vm2, %v210_v46 }
 0x293   :  { %v294_v52 = vpop.f32.mrb[2].mxu0 }
 0x294   :  { %v295_v53 = vadd.f32 %v294_v52, %v220_v51  ;;  %v393_v54 = vpop.f32.mrb[3].mxu0 }
 0x296   :  { %299 = vst.msk [vmem:[#allocation3] sm:$0x1] %vm298_vm3, %v295_v53 }
 0x297   :  { %441 = shalt.err (!%p438_p4)
}
 0x298   :  { %s442_s25 = scalar_lea.hbm %s596_s7, 16 }
 0x299   :  { %p443_p5 = scmp.ne.s32.totalorder %s596_s7, %s442_s25  ;;  %p446_p6 = scmp.lt.u32.totalorder %s442_s25, %s596_s7 }
 0x29b   :  { %p448_p7 = pnand %p446_p6, %p443_p5 }
 0x29d   :  { %451 = shalt.err (!%p448_p7)
}
 0x29e   :  { %309 = dma.vmem_to_hbm [thread:$0]  %s307_s22, 16, %s596_s7, [#allocation4]  }
 0x29f   :  { %452 = dma.done.wait [#allocation4], 16  }
 0x2a0   :  { %453 = vsyncadd [#allocation4], 4294967280 }
 0x2a1   :  { %313 = vsyncpa [#allocation4], 1 }

</bundles_post_ra>
